<compile_context>
chip_gen: v7x
topology: tpu7x:2x2x1
jax: 0.10.0
libtpu: 0.0.40
codegen_flags: <defaults>
</compile_context>

<pallas_src>
import functools

import jax
import jax.numpy as jnp
from jax import lax
from jax.experimental import pallas as pl
from jax.experimental.pallas import tpu as pltpu


# --------------------------------------------------------------------------
# Pre-pass: per-row L2 norms of the embedding table, tiled over the vocab.
# Table is streamed in its native dtype (bf16 ok) and cast after the DMA.
# MXU contraction against a ones row lands the result lane-dense as (1, TV).
# --------------------------------------------------------------------------
def _row_norm_kernel(emb_ref, norms_ref):
    e = emb_ref[...].astype(jnp.float32)               # (TV, D), cast in VMEM
    ones = jnp.ones((1, e.shape[1]), jnp.float32)
    sq = lax.dot_general(                               # (1, TV) = sum_d e[v,d]^2
        ones, e * e, (((1,), (1,)), ((), ())),
        preferred_element_type=jnp.float32)
    norms_ref[...] = jnp.sqrt(sq)                       # L2 norm (torch .norm)


# --------------------------------------------------------------------------
# Main kernel: TB batch rows x TS output positions per grid step.
#   rank[b, j] = #{a : score[b,a] > score[b,j] or (== and a < j)}   (full S)
#   mask[b, j] = rank[b, j] < retain_count                (== topk + scatter_)
# Rank reduction uses a batched MXU contraction with a ones row.
# --------------------------------------------------------------------------
def _topk_mask_kernel(scores_all_ref, scores_strip_ref, mask_ref, *, retain_count):
    s_all = scores_all_ref[...]                         # (TB, S)  competitors
    s_j = scores_strip_ref[...]                         # (TB, TS) this strip
    TB, S = s_all.shape
    TS = s_j.shape[1]

    j_base = pl.program_id(1) * TS
    a_idx = lax.broadcasted_iota(jnp.int32, (S, 1), 0)              # (S, 1)
    j_idx = j_base + lax.broadcasted_iota(jnp.int32, (1, TS), 1)    # (1, TS)
    tie = a_idx < j_idx                                             # (S, TS)

    a3 = s_all[:, :, None]                              # (TB, S, 1)
    j3 = s_j[:, None, :]                                # (TB, 1, TS)
    beats = (a3 > j3) | ((a3 == j3) & tie[None, :, :])  # (TB, S, TS) bool

    # Rank via MXU: ones(TB,1,S) @ beats(TB,S,TS) -> (TB,1,TS), lane-dense.
    ones_row = jnp.ones((TB, 1, S), jnp.float32)
    rank = jnp.einsum('bka,bas->bks', ones_row, beats.astype(jnp.float32),
                      preferred_element_type=jnp.float32)           # (TB,1,TS)

    mask_ref[...] = (rank[:, 0, :] < float(retain_count)).astype(jnp.float32)


# --------------------------------------------------------------------------
# Wrapper
# --------------------------------------------------------------------------
def attention_forget_mask(input_ids, embedding_table, retain_percentage=0.9):
    """input_ids: (B, S) int32, embedding_table: (V, D) -> mask (B, S) f32."""
    B, S = input_ids.shape
    V, D = embedding_table.shape
    retain_count = max(0, min(S, int(S * retain_percentage)))

    # ---- pre-pass: per-row norms of the table (HBM-bandwidth bound) --------
    itemsize = jnp.dtype(embedding_table.dtype).itemsize
    if V <= 128:
        tv = V
    else:
        tv = (4 * 2**20) // max(1, itemsize * D)        # ~4 MiB per input tile
        tv = max(128, (tv // 128) * 128)
        if tv >= V:
            tv = V
    tile_bytes = tv * D * itemsize
    vmem_pre = int(min(56 * 2**20, max(16 * 2**20, 4 * tile_bytes + 2 * 2**20)))

    norms = pl.pallas_call(
        _row_norm_kernel,
        out_shape=jax.ShapeDtypeStruct((1, V), jnp.float32),
        grid=(pl.cdiv(V, tv),),
        in_specs=[pl.BlockSpec((tv, D), lambda v: (v, 0))],
        out_specs=pl.BlockSpec((1, tv), lambda v: (0, v)),
        compiler_params=pltpu.CompilerParams(
            dimension_semantics=("parallel",),
            vmem_limit_bytes=vmem_pre),
    )(embedding_table)

    # ---- O(B*S) score gather; XLA gather in the wrapper (clamps OOB ids) ---
    scores = jnp.take(norms.reshape(V), input_ids, axis=0).astype(jnp.float32)

    # ---- main pass: batched + strip-mined top-k mask ------------------------
    TB = B if B < 8 else 8                               # fills vreg sublanes
    beats_budget = 6 * 2**20                             # ~6 MiB f32 intermediate
    ts = beats_budget // (4 * TB * S)
    if ts >= S:
        TS = S                                           # single strip
    else:
        TS = min(S, max(128, (ts // 128) * 128))         # lane-aligned strips
    est_beats = 4 * TB * S * TS
    vmem_main = int(min(56 * 2**20, max(24 * 2**20, 3 * est_beats + 2 * 2**20)))

    kernel = functools.partial(_topk_mask_kernel, retain_count=retain_count)
    mask = pl.pallas_call(
        kernel,
        out_shape=jax.ShapeDtypeStruct((B, S), jnp.float32),
        grid=(pl.cdiv(B, TB), pl.cdiv(S, TS)),
        in_specs=[pl.BlockSpec((TB, S), lambda i, t: (i, 0)),   # competitors
                  pl.BlockSpec((TB, TS), lambda i, t: (i, t))],  # strip
        out_specs=pl.BlockSpec((TB, TS), lambda i, t: (i, t)),
        compiler_params=pltpu.CompilerParams(
            dimension_semantics=("parallel", "parallel"),
            vmem_limit_bytes=vmem_main),
    )(scores, scores)

    return mask


# --------------------------------------------------------------------------
# Pure-JAX reference mirroring the PyTorch forward (topk + scatter_)
# --------------------------------------------------------------------------
def _reference(input_ids, emb, retain_percentage=0.9):
    B, S = input_ids.shape
    retain_count = int(S * retain_percentage)
    toks = emb[input_ids]                         # (B, S, D)
    scores = jnp.linalg.norm(toks.astype(jnp.float32), axis=-1)
    _, idx = lax.top_k(scores, retain_count)      # (B, retain_count)
    mask = jnp.zeros((B, S), jnp.float32)
    mask = mask.at[jnp.arange(B)[:, None], idx].set(1.0)
    return mask


if __name__ == "__main__":
    # Small deterministic setup consistent with the module's forward:
    # vocab V=64, embed dim D=32, batch B=2, seq S=8, retain 90% -> keep 7 of 8.
    B, S, V, D = 2, 8, 64, 32
    key = jax.random.PRNGKey(0)
    k_emb, k_ids = jax.random.split(key)
    embedding_table = jax.random.normal(k_emb, (V, D), dtype=jnp.float32)
    input_ids = jax.random.randint(k_ids, (B, S), 0, V, dtype=jnp.int32)

    mask = attention_forget_mask(input_ids, embedding_table)
    jax.block_until_ready(mask)

    ref = _reference(input_ids, embedding_table)
    assert mask.shape == (B, S) and mask.dtype == jnp.float32
    assert jnp.allclose(mask, ref), (mask, ref)
    print("KERNEL_OK")
</pallas_src>

<mosaic_0001>
module attributes {stable_mosaic.version = 11 : i64} {
  func.func @_row_norm_kernel(%arg0: i32, %arg1: memref<64x32xf32, #tpu.memory_space<vmem>>, %arg2: memref<1x64xf32, #tpu.memory_space<vmem>>) attributes {dimension_semantics = [#tpu.dimension_semantics<parallel>], iteration_bounds = array<i64: 1>, scalar_prefetch = 0 : i64, scratch_operands = 0 : i64, tpu.core_type = #tpu.core_type<tc>, window_params = [{transform_indices = @transform_0, window_bounds = array<i64: 64, 32>}, {transform_indices = @transform_1, window_bounds = array<i64: 1, 64>}]} {
    %c0 = arith.constant 0 : index
    %c0_0 = arith.constant 0 : index
    %0 = vector.load %arg1[%c0, %c0_0] : memref<64x32xf32, #tpu.memory_space<vmem>>, vector<64x32xf32>
    %cst = arith.constant 1.000000e+00 : f32
    %1 = vector.broadcast %cst : f32 to vector<1x32xf32>
    %2 = arith.mulf %0, %0 : vector<64x32xf32>
    %cst_1 = arith.constant dense<0.000000e+00> : vector<1x64xf32>
    %3 = tpu.matmul %1, %2, %cst_1 {dimension_numbers = #tpu.dot_dimension_numbers<[1], [1], [0], [0], [0, 0, 1, 0], [], []>} : vector<1x32xf32>, vector<64x32xf32>, vector<1x64xf32> -> vector<1x64xf32>
    %4 = math.sqrt %3 : vector<1x64xf32>
    %c0_2 = arith.constant 0 : index
    %c0_3 = arith.constant 0 : index
    %5 = vector.load %arg2[%c0_2, %c0_3] : memref<1x64xf32, #tpu.memory_space<vmem>>, vector<1x64xf32>
    tpu.vector_store %arg2[%c0_2, %c0_3], %4 {strides = array<i32>} : memref<1x64xf32, #tpu.memory_space<vmem>>, vector<1x64xf32>,
    return
  }
  func.func @transform_0(%arg0: i32) -> (i32, i32) {
    %c0_i32 = arith.constant 0 : i32
    %c0_i32_0 = arith.constant 0 : i32
    return %arg0, %c0_i32 : i32, i32
  }
  func.func @transform_1(%arg0: i32) -> (i32, i32) {
    %c0_i32 = arith.constant 0 : i32
    %c0_i32_0 = arith.constant 0 : i32
    return %c0_i32, %arg0 : i32, i32
  }
}

</mosaic_0001>

<bundles_post_ra>
// kernel: tpu_custom_call.1
= control target key start
LH: loop header
LB: loop body
LE: loop exit
PB: predicated region body
PF: predicated region fallthrough
CT: control target
= control target key end

     0   :  { %vm25_vm0 = vcmask 261120   ;;  %v230_v2 = vmov 0.0|0.0   ;;  %vm231_vm2 = vmmov 0   ;;  %v232_v8 = vmov 0.0   ;;  %s296_s0 = inlined_call_operand.vmem [shape: f32[64,32], index: 0, kind: input, shape index: {}]   ;;  %s297_s1 = inlined_call_operand.hbm [shape: f32[1,64], index: 1, kind: output, shape index: {}]  }
   0x1   :  { %v9_v0 = vld [vmem:[%s296_s0] sm:$0xff]  ;;  %v10_v1 = vld [vmem:[%s296_s0 + $0x8] sm:$0xff]  ;;  %183 = vmatprep.subr.bf16.mxu0 %v230_v2  ;;  %vm253_vm1 = vmpackc.low %vm25_vm0, %vm25_vm0  ;;  %180 = vmatprep.mubr.msk.f32.mxu0 %vm231_vm2, %v232_v8 }
   0x2   :  { %v17_v3 = vmul.f32 %v9_v0, %v9_v0  ;;  %v18_v4 = vmul.f32 %v10_v1, %v10_v1  ;;  %v11_v6 = vld [vmem:[%s296_s0 + $0x10] sm:$0xff]  ;;  %v12_v7 = vld [vmem:[%s296_s0 + $0x18] sm:$0xff] }
   0x4   :  { %v184_v9 = vpack.c.bf16 %v18_v4, %v17_v3 }
   0x5   :  { %6 = vsyncpa [#allocation3], 0  ;;  %v19_v10 = vmul.f32 %v11_v6, %v11_v6  ;;  %v20_v11 = vmul.f32 %v12_v7, %v12_v7  ;;  %v13_v13 = vld [vmem:[%s296_s0 + $0x20] sm:$0xff]  ;;  %v14_v14 = vld [vmem:[%s296_s0 + $0x28] sm:$0xff]  ;;  %v233_v23 = vmov 1.0   ;;  %s234_s22 = smov [#allocation2]  }
   0x6   :  { %186 = vmatpush3.bf16.xpose.msk.msra.mxu0 %vm253_vm1, %v184_v9  ;;  %v21_v15 = vmul.f32 %v13_v13, %v13_v13  ;;  %v22_v16 = vmul.f32 %v14_v14, %v14_v14  ;;  %v15_v18 = vld [vmem:[%s296_s0 + $0x30] sm:$0xff]  ;;  %v16_v19 = vld [vmem:[%s296_s0 + $0x38] sm:$0xff]  ;;  %s138_s23 = sshll.u32 %s234_s22, 4  ;;  %vm130_vm4 = vcmask 516096   ;;  %s139_s23 = int_to_ptr.vmem [resolvable:$true] %s138_s23 }
   0x7   :  { %187 = vmatprep.subr.bf16.mxu0 %v230_v2  ;;  %v188_v12 = vpack.c.bf16 %v20_v11, %v19_v10  ;;  %v23_v20 = vmul.f32 %v15_v18, %v15_v18  ;;  %v24_v21 = vmul.f32 %v16_v19, %v16_v19  ;;  %s206_s0 = scalar_lea.vmem %s139_s23, 16  ;;  %s210_s24 = scalar_lea.vmem %s139_s23, 32 }
   0x8   :  { %v192_v17 = vpack.c.bf16 %v22_v16, %v21_v15  ;;  %p207_p0 = scmp.ne.s32.totalorder %s139_s23, %s206_s0  ;;  %p211_p1 = scmp.lt.s32.totalorder %s139_s23, %s139_s23 }
   0x9   :  { %v196_v22 = vpack.c.bf16 %v24_v21, %v23_v20  ;;  %p212_p2 = scmp.lt.s32.totalorder %s210_s24, %s206_s0 }
   0xb   :  { %p213_p3 = por %p212_p2, %p211_p1 }
   0xd   :  { %p214_p4 = pnand %p213_p3, %p207_p0 }
   0xe   :  { %190 = vmatpush3.bf16.xpose.msk.msra.mxu0 %vm253_vm1, %v188_v12 }
   0xf   :  { %191 = vmatprep.subr.bf16.mxu0 %v230_v2 }
  0x16   :  { %194 = vmatpush3.bf16.xpose.msk.msra.mxu0 %vm253_vm1, %v192_v17 }
  0x17   :  { %195 = vmatprep.subr.bf16.mxu0 %v230_v2 }
  0x1e   :  { %198 = vmatpush3.bf16.xpose.msk.msra.mxu0 %vm253_vm1, %v196_v22 }
  0x25   :  { %181 = vmatmul.mubr.msk.f32.vlgmr.msra.gmra.mrb[0].mxu0 %vm25_vm0, %v233_v23 }
  0xf8   :  { %v119_v24 = vpop.f32.mrb[0].mxu0 }
  0xf9   :  { %204 = vrsqrt.f32 %v119_v24  ;;  %v182_v25 = vpop.f32.mrb[1].mxu0  ;;  %vm125_vm3 = vcmp.eq.f32.partialorder %v119_v24, inf  ;;  %v128_v28 = vand.u32 2147483648, %v119_v24  ;;  %vm127_vm5 = vcmp.eq.f32.partialorder %v119_v24, 0.0 }
 0x103   :  { %v205_v26 = vpop.eup %204 }
 0x104   :  { %v124_v27 = vmul.f32 %v205_v26, %v119_v24 }
 0x106   :  { %v126_v29 = vsel %vm125_vm3, %v119_v24, %v124_v27 }
 0x107   :  { %v129_v30 = vsel %vm127_vm5, %v128_v28, %v126_v29 }
 0x108   :  { %131 = vst.msk [vmem:[#allocation2] sm:$0x1] %vm130_vm4, %v129_v30 }
 0x109   :  { %217 = shalt.err (!%p214_p4)
}
 0x10a   :  { %s218_s27 = scalar_lea.hbm %s297_s1, 16 }
 0x10b   :  { %p219_p5 = scmp.ne.s32.totalorder %s297_s1, %s218_s27  ;;  %p222_p6 = scmp.lt.u32.totalorder %s218_s27, %s297_s1 }
 0x10d   :  { %p224_p7 = pnand %p222_p6, %p219_p5 }
 0x10f   :  { %227 = shalt.err (!%p224_p7)
}
 0x110   :  { %141 = dma.vmem_to_hbm [thread:$0]  %s139_s23, 16, %s297_s1, [#allocation3]  }
 0x111   :  { %228 = dma.done.wait [#allocation3], 16  }
 0x112   :  { %229 = vsyncadd [#allocation3], 4294967280 }
 0x113   :  { %145 = vsyncpa [#allocation3], 1 }

</bundles_post_ra>
